<compile_context>
chip_gen: v6e
topology: v6e:2x2x1
jax: 0.10.0
libtpu: 0.0.40
codegen_flags: <defaults>
</compile_context>

<pallas_src>
import math

import jax
import jax.numpy as jnp
from jax.experimental import pallas as pl
from jax.experimental.pallas import tpu as pltpu


def _round_up(x, m):
    return (x + m - 1) // m * m


def _cdiv(a, b):
    return (a + b - 1) // b


def _critic_kernel(x_ref, w1_ref, b1_ref, w2_ref, b2_ref, w3_ref, b3_ref,
                   out_ref):
    """Fused MLP tile: relu(x@W1+b1) -> relu(.@W2+b2) -> .*w3 sum + b3.

    x_ref:  (TB, S)        f32 batch tile (raw states, ragged last tile OK)
    w1_ref: (S, H_pad)     bf16/f32 (resident)
    b1_ref: (1, H_pad)     f32      (resident)
    w2_ref: (H_pad, H_pad) bf16/f32 (resident)
    b2_ref: (1, H_pad)     f32      (resident)
    w3_ref: (1, H_pad)     f32 row  (resident, used on the VPU)
    b3_ref: (1, 1)         f32 scalar in SMEM
    out_ref:(1, TB)        f32, values laid along the lane axis
    """
    # Cast the streamed f32 states to the weight dtype per tile (VPU has slack;
    # this removes a whole wrapper-side HBM pad/cast pass).
    x = x_ref[...].astype(w1_ref.dtype)

    # Layer 1: MXU matmul (f32 accumulate); bias+ReLU epilogue in f32 on VPU
    # (v5e's VPU has no bf16 ALUs, so f32 epilogues are the right choice).
    h1 = jnp.dot(x, w1_ref[...], preferred_element_type=jnp.float32)
    h1 = jnp.maximum(h1 + b1_ref[...], 0.0)

    # Layer 2: same pattern; re-cast activations to the weight dtype for the MXU.
    h2 = jnp.dot(h1.astype(w2_ref.dtype), w2_ref[...],
                 preferred_element_type=jnp.float32)
    h2 = jnp.maximum(h2 + b2_ref[...], 0.0)

    # Layer 3 (output width 1): VPU multiply + XLU lane-reduce (both units
    # otherwise idle), then a lane-dense (1, TB) store.
    v = jnp.sum(h2 * w3_ref[...], axis=-1) + b3_ref[0, 0]      # (TB,)
    out_ref[...] = v[None, :].astype(out_ref.dtype)            # (1, TB)


def prepare_params(params, dtype=jnp.bfloat16):
    """One-time packing: pre-transposed weights, hidden dim zero-padded to 128.

    The state dim is left unpadded (the x block carries the full state dim).
    Hidden-dim zero-padding is exact: padded columns compute ReLU(0 + 0) = 0
    and the matching padded rows of the next weight contribute nothing.
    """
    S, H = params["w1"].shape
    H_pad = _round_up(H, 128)
    w1 = jnp.pad(params["w1"], ((0, 0), (0, H_pad - H))).astype(dtype)
    b1 = jnp.pad(params["b1"], ((0, 0), (0, H_pad - H))).astype(jnp.float32)
    w2 = jnp.pad(params["w2"], ((0, H_pad - H), (0, H_pad - H))).astype(dtype)
    b2 = jnp.pad(params["b2"], ((0, 0), (0, H_pad - H))).astype(jnp.float32)
    # w3 as a (1, H_pad) f32 row: used on the VPU, not the MXU.
    w3_row = jnp.pad(params["w3"].T, ((0, 0), (0, H_pad - H))).astype(jnp.float32)
    b3 = params["b3"].astype(jnp.float32)                       # (1, 1) -> SMEM
    return {"w1": w1, "b1": b1, "w2": w2, "b2": b2,
            "w3_row": w3_row, "b3": b3, "state_dim": S}


def r_critic_forward(states, prep, block_rows=2048):
    """Runs the fused R_Critic forward pass.

    states: [B, state_dim] float32 (streamed raw; cast happens in-kernel)
    prep:   output of prepare_params()
    returns: values [B, 1] float32
    block_rows: max batch tile (multiple of 128).  Default 2048 amortizes the
                per-grid-step overhead; the tile is additionally shrunk so the
                batch splits roughly evenly across v7x's two TensorCores.
    """
    B, S = states.shape
    assert S == prep["state_dim"], (S, prep["state_dim"])
    H_pad = prep["w1"].shape[1]

    block_rows = _round_up(max(int(block_rows), 128), 128)
    # Megacore-friendly tile: at least 2 roughly-even tiles once B > 128 so the
    # "parallel" batch axis actually uses both v7x TensorCores.
    TB = max(128, min(block_rows, _round_up(_cdiv(B, 2), 128)))
    num_tiles = _cdiv(B, TB)          # ragged last tile handled by Pallas

    def _resident(arr):
        # Full-array block with a constant index -> DMA'd once, stays in VMEM.
        return pl.BlockSpec(arr.shape, lambda i, _n=arr.ndim: (0,) * _n)

    # Explicit scoped-VMEM budget: resident weights (x2 for buffering slack),
    # double-buffered x/out tiles, headroom for f32 intermediates + margin.
    def _nbytes(a):
        return int(a.size) * int(a.dtype.itemsize)

    weight_bytes = sum(_nbytes(prep[k])
                       for k in ("w1", "b1", "w2", "b2", "w3_row"))
    x_tile_bytes = TB * S * 4
    out_tile_bytes = 8 * TB * 4           # (1, TB) block padded to 8 sublanes
    act_bytes = 3 * TB * H_pad * 4        # h1/h2 spill headroom
    vmem_limit = (2 * weight_bytes + 2 * x_tile_bytes + 2 * out_tile_bytes
                  + act_bytes + (4 << 20))
    vmem_limit = int(min(vmem_limit, 64 * 1024 * 1024))  # v7x per-TC ceiling

    out = pl.pallas_call(
        _critic_kernel,
        out_shape=jax.ShapeDtypeStruct((1, num_tiles * TB), jnp.float32),
        grid=(num_tiles,),
        in_specs=[
            pl.BlockSpec((TB, S), lambda i: (i, 0)),              # states tile
            _resident(prep["w1"]),
            _resident(prep["b1"]),
            _resident(prep["w2"]),
            _resident(prep["b2"]),
            _resident(prep["w3_row"]),
            pl.BlockSpec(memory_space=pltpu.MemorySpace.SMEM),    # b3 scalar
        ],
        # Lane-dense output; sublane dim 1 == full array dim, so this block
        # shape is legal for any num_tiles (unlike a (num_tiles, TB) layout).
        out_specs=pl.BlockSpec((1, TB), lambda i: (0, i)),
        compiler_params=pltpu.CompilerParams(
            dimension_semantics=("parallel",),
            vmem_limit_bytes=vmem_limit),
    )(states, prep["w1"], prep["b1"], prep["w2"], prep["b2"],
      prep["w3_row"], prep["b3"])

    # Layout plumbing back to the PyTorch-shaped result; rows past B (ragged
    # tile garbage) are sliced off here and never reduced over.
    return out.reshape(num_tiles * TB, 1)[:B]


def init_params(key, state_dim, hidden_size):
    """Deterministic kaiming-uniform-style init (synthetic weights).

    Weights are stored pre-transposed as [in, out] so the kernel computes
    y = x @ W + b (same math as nn.Linear's y = x @ W.T + b).
    """
    def kaiming_uniform(k, fan_in, shape):
        bound = math.sqrt(6.0 / fan_in)
        return jax.random.uniform(k, shape, jnp.float32, -bound, bound)

    ks = jax.random.split(key, 6)
    return {
        "w1": kaiming_uniform(ks[0], state_dim, (state_dim, hidden_size)),
        "b1": kaiming_uniform(ks[1], state_dim, (1, hidden_size)),
        "w2": kaiming_uniform(ks[2], hidden_size, (hidden_size, hidden_size)),
        "b2": kaiming_uniform(ks[3], hidden_size, (1, hidden_size)),
        "w3": kaiming_uniform(ks[4], hidden_size, (hidden_size, 1)),
        "b3": kaiming_uniform(ks[5], hidden_size, (1, 1)),
    }


def reference_forward(states, params):
    """Pure-JAX f32 reference (matches the PyTorch module's forward)."""
    h1 = jnp.maximum(states @ params["w1"] + params["b1"], 0.0)
    h2 = jnp.maximum(h1 @ params["w2"] + params["b2"], 0.0)
    return h2 @ params["w3"] + params["b3"]


if __name__ == "__main__":
    key = jax.random.PRNGKey(0)
    k_x, k_p, k_x2 = jax.random.split(key, 3)

    batch = 8
    state_dim = 16
    hidden_size = 32

    states = jax.random.normal(k_x, (batch, state_dim), jnp.float32)
    params = init_params(k_p, state_dim, hidden_size)
    ref = reference_forward(states, params)

    # 1) f32 weight path, single tile: tight check of the fused kernel structure.
    prep_f32 = prepare_params(params, dtype=jnp.float32)
    v_f32 = jax.block_until_ready(r_critic_forward(states, prep_f32))
    assert v_f32.shape == (batch, 1), v_f32.shape
    assert jnp.allclose(v_f32, ref, atol=1e-4, rtol=1e-4), "f32 mismatch vs reference"

    # 2) Default bf16-MXU / f32-accumulate path (production config on v6e/v7x).
    prep_bf16 = prepare_params(params, dtype=jnp.bfloat16)
    v_bf16 = jax.block_until_ready(r_critic_forward(states, prep_bf16))
    assert v_bf16.shape == (batch, 1), v_bf16.shape
    assert jnp.allclose(v_bf16, ref, atol=3e-2, rtol=3e-2), "bf16 mismatch vs reference"

    # 3) Multi-tile + ragged batch (B > TB and B % TB != 0): exercises the
    #    (1, TB) output blocks across several tiles and the [:B] slicing.
    batch2 = 300
    states2 = jax.random.normal(k_x2, (batch2, state_dim), jnp.float32)
    ref2 = reference_forward(states2, params)

    v2_f32 = jax.block_until_ready(
        r_critic_forward(states2, prep_f32, block_rows=128))
    assert v2_f32.shape == (batch2, 1), v2_f32.shape
    assert jnp.allclose(v2_f32, ref2, atol=1e-4, rtol=1e-4), \
        "f32 multi-tile mismatch vs reference"

    v2_bf16 = jax.block_until_ready(
        r_critic_forward(states2, prep_bf16, block_rows=128))
    assert v2_bf16.shape == (batch2, 1), v2_bf16.shape
    assert jnp.allclose(v2_bf16, ref2, atol=1e-1, rtol=1e-1), \
        "bf16 multi-tile mismatch vs reference"

    print("KERNEL_OK")
</pallas_src>

<mosaic_0001>
module attributes {stable_mosaic.version = 11 : i64} {
  func.func @_critic_kernel(%arg0: i32, %arg1: memref<128x16xf32, #tpu.memory_space<vmem>>, %arg2: memref<16x128xf32, #tpu.memory_space<vmem>>, %arg3: memref<1x128xf32, #tpu.memory_space<vmem>>, %arg4: memref<128x128xf32, #tpu.memory_space<vmem>>, %arg5: memref<1x128xf32, #tpu.memory_space<vmem>>, %arg6: memref<1x128xf32, #tpu.memory_space<vmem>>, %arg7: memref<1x1xf32, #tpu.memory_space<smem>>, %arg8: memref<1x128xf32, #tpu.memory_space<vmem>>) attributes {dimension_semantics = [#tpu.dimension_semantics<parallel>], iteration_bounds = array<i64: 1>, scalar_prefetch = 0 : i64, scratch_operands = 0 : i64, tpu.core_type = #tpu.core_type<tc>, window_params = [{transform_indices = @transform_0, window_bounds = array<i64: 128, 16>}, {pipeline_mode = #tpu.pipeline_mode<synchronous>, transform_indices = @transform_1, window_bounds = array<i64: 16, 128>}, {pipeline_mode = #tpu.pipeline_mode<synchronous>, transform_indices = @transform_2, window_bounds = array<i64: 1, 128>}, {pipeline_mode = #tpu.pipeline_mode<synchronous>, transform_indices = @transform_3, window_bounds = array<i64: 128, 128>}, {pipeline_mode = #tpu.pipeline_mode<synchronous>, transform_indices = @transform_4, window_bounds = array<i64: 1, 128>}, {pipeline_mode = #tpu.pipeline_mode<synchronous>, transform_indices = @transform_5, window_bounds = array<i64: 1, 128>}, {transform_indices = @transform_6, window_bounds = array<i64: 1, 1>}, {transform_indices = @transform_7, window_bounds = array<i64: 1, 128>}]} {
    %c0 = arith.constant 0 : index
    %c0_0 = arith.constant 0 : index
    %0 = vector.load %arg1[%c0, %c0_0] : memref<128x16xf32, #tpu.memory_space<vmem>>, vector<128x16xf32>
    %c0_1 = arith.constant 0 : index
    %c0_2 = arith.constant 0 : index
    %1 = vector.load %arg2[%c0_1, %c0_2] : memref<16x128xf32, #tpu.memory_space<vmem>>, vector<16x128xf32>
    %cst = arith.constant dense<0.000000e+00> : vector<128x128xf32>
    %2 = tpu.matmul %0, %1, %cst {dimension_numbers = #tpu.dot_dimension_numbers<[1], [0], [0], [1], [0, 0, 1, 1], [], []>} : vector<128x16xf32>, vector<16x128xf32>, vector<128x128xf32> -> vector<128x128xf32>
    %c0_3 = arith.constant 0 : index
    %c0_4 = arith.constant 0 : index
    %3 = vector.load %arg3[%c0_3, %c0_4] : memref<1x128xf32, #tpu.memory_space<vmem>>, vector<1x128xf32>
    %4 = vector.broadcast %3 : vector<1x128xf32> to vector<128x128xf32>
    %5 = arith.addf %2, %4 : vector<128x128xf32>
    %cst_5 = arith.constant 0.000000e+00 : f32
    %6 = vector.broadcast %cst_5 : f32 to vector<128x128xf32>
    %7 = arith.maximumf %5, %6 : vector<128x128xf32>
    %c0_6 = arith.constant 0 : index
    %c0_7 = arith.constant 0 : index
    %8 = vector.load %arg4[%c0_6, %c0_7] : memref<128x128xf32, #tpu.memory_space<vmem>>, vector<128x128xf32>
    %cst_8 = arith.constant dense<0.000000e+00> : vector<128x128xf32>
    %9 = tpu.matmul %7, %8, %cst_8 {dimension_numbers = #tpu.dot_dimension_numbers<[1], [0], [0], [1], [0, 0, 1, 1], [], []>} : vector<128x128xf32>, vector<128x128xf32>, vector<128x128xf32> -> vector<128x128xf32>
    %c0_9 = arith.constant 0 : index
    %c0_10 = arith.constant 0 : index
    %10 = vector.load %arg5[%c0_9, %c0_10] : memref<1x128xf32, #tpu.memory_space<vmem>>, vector<1x128xf32>
    %11 = vector.broadcast %10 : vector<1x128xf32> to vector<128x128xf32>
    %12 = arith.addf %9, %11 : vector<128x128xf32>
    %cst_11 = arith.constant 0.000000e+00 : f32
    %13 = vector.broadcast %cst_11 : f32 to vector<128x128xf32>
    %14 = arith.maximumf %12, %13 : vector<128x128xf32>
    %c0_12 = arith.constant 0 : index
    %c0_13 = arith.constant 0 : index
    %15 = vector.load %arg6[%c0_12, %c0_13] : memref<1x128xf32, #tpu.memory_space<vmem>>, vector<1x128xf32>
    %16 = vector.broadcast %15 : vector<1x128xf32> to vector<128x128xf32>
    %17 = arith.mulf %14, %16 : vector<128x128xf32>
    %cst_14 = arith.constant dense<0.000000e+00> : vector<128xf32>
    %18 = vector.multi_reduction <add>, %17, %cst_14 [1] : vector<128x128xf32> to vector<128xf32>
    %c0_15 = arith.constant 0 : index
    %c0_16 = arith.constant 0 : index
    %19 = memref.load %arg7[%c0_15, %c0_16] : memref<1x1xf32, #tpu.memory_space<smem>>
    %20 = vector.broadcast %19 : f32 to vector<128xf32>
    %21 = arith.addf %18, %20 : vector<128xf32>
    %22 = vector.shape_cast %21 : vector<128xf32> to vector<1x128xf32>
    %c0_17 = arith.constant 0 : index
    %c0_18 = arith.constant 0 : index
    %23 = vector.load %arg8[%c0_17, %c0_18] : memref<1x128xf32, #tpu.memory_space<vmem>>, vector<1x128xf32>
    tpu.vector_store %arg8[%c0_17, %c0_18], %22 {strides = array<i32>} : memref<1x128xf32, #tpu.memory_space<vmem>>, vector<1x128xf32>,
    return
  }
  func.func @transform_0(%arg0: i32) -> (i32, i32) {
    %c0_i32 = arith.constant 0 : i32
    %c0_i32_0 = arith.constant 0 : i32
    return %arg0, %c0_i32 : i32, i32
  }
  func.func @transform_1(%arg0: i32) -> (i32, i32) {
    %c0_i32 = arith.constant 0 : i32
    %c0_i32_0 = arith.constant 0 : i32
    %c0_i32_1 = arith.constant 0 : i32
    return %c0_i32, %c0_i32_0 : i32, i32
  }
  func.func @transform_2(%arg0: i32) -> (i32, i32) {
    %c0_i32 = arith.constant 0 : i32
    %c0_i32_0 = arith.constant 0 : i32
    %c0_i32_1 = arith.constant 0 : i32
    return %c0_i32, %c0_i32_0 : i32, i32
  }
  func.func @transform_3(%arg0: i32) -> (i32, i32) {
    %c0_i32 = arith.constant 0 : i32
    %c0_i32_0 = arith.constant 0 : i32
    %c0_i32_1 = arith.constant 0 : i32
    return %c0_i32, %c0_i32_0 : i32, i32
  }
  func.func @transform_4(%arg0: i32) -> (i32, i32) {
    %c0_i32 = arith.constant 0 : i32
    %c0_i32_0 = arith.constant 0 : i32
    %c0_i32_1 = arith.constant 0 : i32
    return %c0_i32, %c0_i32_0 : i32, i32
  }
  func.func @transform_5(%arg0: i32) -> (i32, i32) {
    %c0_i32 = arith.constant 0 : i32
    %c0_i32_0 = arith.constant 0 : i32
    %c0_i32_1 = arith.constant 0 : i32
    return %c0_i32, %c0_i32_0 : i32, i32
  }
  func.func @transform_6(%arg0: i32) -> (i32, i32) {
    %c0_i32 = arith.constant 0 : i32
    %c0_i32_0 = arith.constant 0 : i32
    %c0_i32_1 = arith.constant 0 : i32
    return %c0_i32, %c0_i32_0 : i32, i32
  }
  func.func @transform_7(%arg0: i32) -> (i32, i32) {
    %c0_i32 = arith.constant 0 : i32
    %c0_i32_0 = arith.constant 0 : i32
    return %c0_i32, %arg0 : i32, i32
  }
}

</mosaic_0001>

<bundles_post_ra>
// kernel: tpu_custom_call.1
= control target key start
LH: loop header
LB: loop body
LE: loop exit
PB: predicated region body
PF: predicated region fallthrough
CT: control target
= control target key end

     0   :  { %13 = vsyncpa [#allocation4], 0  ;;  %s1159_s0 = inlined_call_operand.hbm [shape: f32[8,16], index: 0, kind: input, shape index: {}]   ;;  %s1160_s1 = inlined_call_operand.hbm [shape: f32[16,128], index: 1, kind: input, shape index: {}]   ;;  %s1161_s2 = inlined_call_operand.vmem [shape: f32[1,128], index: 2, kind: input, shape index: {}]   ;;  %s1162_s3 = inlined_call_operand.hbm [shape: f32[128,128], index: 3, kind: input, shape index: {}]   ;;  %s1163_s4 = inlined_call_operand.vmem [shape: f32[1,128], index: 4, kind: input, shape index: {}]   ;;  %s1164_s5 = inlined_call_operand.vmem [shape: f32[1,128], index: 5, kind: input, shape index: {}]   ;;  %s1165_s6 = inlined_call_operand.<no memory space> [shape: f32[1,1], index: 6, kind: input, shape index: {}]   ;;  %s1166_s7 = inlined_call_operand.hbm [shape: f32[1,128], index: 7, kind: output, shape index: {}]  }
   0x1   :  { %14 = vsyncpa [#allocation7], 0 }
   0x2   :  { %15 = vsyncpa [#allocation5], 0 }
   0x3   :  { %20 = vsyncadd [#allocation4], 1920  ;;  %s983_s24 = smov [#allocation6]   ;;  %s984_s26 = smov [#allocation3]  }
   0x4   :  { %s33_s25 = sshll.u32 %s983_s24, 4  ;;  %s21_s27 = sshll.u32 %s984_s26, 4  ;;  %s34_s25 = int_to_ptr.vmem [resolvable:$true] %s33_s25  ;;  %s22_s27 = int_to_ptr.vmem [resolvable:$true] %s21_s27 }
   0x5   :  { %s905_s28 = scalar_lea.vmem %s34_s25, 256  ;;  %p910_p1 = scmp.lt.s32.totalorder %s34_s25, %s34_s25 }
   0x6   :  { %p906_p0 = scmp.ne.s32.totalorder %s34_s25, %s905_s28  ;;  %p911_p2 = scmp.lt.s32.totalorder %s905_s28, %s905_s28 }
   0x8   :  { %p912_p3 = por %p911_p2, %p910_p1 }
   0xa   :  { %p913_p4 = pnand %p912_p3, %p906_p0 }
   0xc   :  { %916 = shalt.err (!%p913_p4)
}
   0xd   :  { %s985_s29 = smov 128   ;;  %s986_s30 = smov 8  }
   0xe   :  { %39 = dma.hbm_to_vmem [thread:$0]  %s1160_s1, 256, %s34_s25, [#allocation7], %s985_s29, %s985_s29, %s986_s30  }
   0xf   :  { %s925_s10 = scalar_lea.vmem %s22_s27, 128  ;;  %s929_s11 = scalar_lea.vmem %s22_s27, 2048 }
  0x10   :  { %p926_p5 = scmp.ne.s32.totalorder %s22_s27, %s925_s10  ;;  %p930_p6 = scmp.lt.s32.totalorder %s22_s27, %s22_s27 }
  0x11   :  { %p931_p7 = scmp.lt.s32.totalorder %s929_s11, %s925_s10 }
  0x13   :  { %p932_p8 = por %p931_p7, %p930_p6 }
  0x15   :  { %p933_p9 = pnand %p932_p8, %p926_p5 }
  0x17   :  { %936 = shalt.err (!%p933_p9)
}
  0x18   :  { %27 = dma.hbm_to_vmem [thread:$0]  %s1159_s0, 128, %s22_s27, [#allocation4], %s985_s29, %s985_s29, %s986_s30  }
  0x19   :  { %s987_s14 = smov [#allocation8]  }
  0x1a   :  { %s47_s15 = sshll.u32 %s987_s14, 4  ;;  %s48_s15 = int_to_ptr.vmem [resolvable:$true] %s47_s15 }
  0x1b   :  { %s945_s16 = scalar_lea.vmem %s48_s15, 2048  ;;  %p950_p11 = scmp.lt.s32.totalorder %s48_s15, %s48_s15 }
  0x1c   :  { %p946_p10 = scmp.ne.s32.totalorder %s48_s15, %s945_s16  ;;  %p951_p12 = scmp.lt.s32.totalorder %s945_s16, %s945_s16 }
  0x1e   :  { %p952_p13 = por %p951_p12, %p950_p11 }
  0x20   :  { %p953_p0 = pnand %p952_p13, %p946_p10 }
  0x22   :  { %956 = shalt.err (!%p953_p0)
}
  0x23   :  { %53 = dma.hbm_to_vmem [thread:$0]  %s1162_s3, 2048, %s48_s15, [#allocation7], %s985_s29, %s985_s29, %s986_s30  }
  0x24   :  { %977 = dma.done.wait [#allocation4], 2048  }
  0x25   :  { %978 = vsyncadd [#allocation4], 4294965248 }
  0x26   :  { %979 = dma.done.wait [#allocation7], 2304  }
  0x27   :  { %980 = vsyncadd [#allocation7], 4294964992  ;;  %vm94_vm0 = vcmask 130048   ;;  %v86_v0 = vld [vmem:[#allocation6 + $0x8] sm:$0xff]  ;;  %v85_v1 = vld [vmem:[#allocation6] sm:$0xff]  ;;  %vm588_vm1 = vcmask 130112  }
  0x28   :  { %v69_v2 = vld [vmem:[#allocation3] sm:$0xff]  ;;  %775 = vmatprep.subr.mxu0 %v86_v0  ;;  %v70_v3 = vld [vmem:[#allocation3 + $0x8] sm:$0xff]  ;;  %v71_v4 = vld [vmem:[#allocation3 + $0x10] sm:$0xff]  ;;  %vm595_vm2 = vcmask 195712   ;;  %vm602_vm3 = vcmask 261312   ;;  %vm609_vm4 = vcmask 326912  }
  0x29   :  { %779 = vmatprep.mubr.msk.f32.mxu0 %vm94_vm0, %v69_v2  ;;  %776 = vmatpush3.msra.mxu0 %v86_v0  ;;  %v72_v5 = vld [vmem:[#allocation3 + $0x18] sm:$0xff]  ;;  %v319_v6 = vld [vmem:[#allocation8 + $0x78] sm:$0xff]  ;;  %v318_v7 = vld [vmem:[#allocation8 + $0x70] sm:$0xff]  ;;  %vm616_vm5 = vcmask 392512   ;;  %vm623_vm6 = vcmask 458112   ;;  %vm630_vm7 = vcmask 523712  }
  0x2a   :  { %777 = vmatprep.subr.mxu0 %v85_v1  ;;  %v73_v8 = vld [vmem:[#allocation3 + $0x20] sm:$0xff]  ;;  %859 = vmatprep.subr.mxu1 %v319_v6  ;;  %v317_v9 = vld [vmem:[#allocation8 + $0x68] sm:$0xff]  ;;  %v74_v10 = vld [vmem:[#allocation3 + $0x28] sm:$0xff]  ;;  %vm637_vm8 = vcmask 589312   ;;  %vm644_vm9 = vcmask 654912   ;;  %vm651_vm10 = vcmask 720512  }
  0x2b   :  { %778 = vmatpush3.msra.mxu0 %v85_v1  ;;  %875 = vmatpush3.msra.mxu1 %v319_v6  ;;  %v316_v11 = vld [vmem:[#allocation8 + $0x60] sm:$0xff]  ;;  %v315_v13 = vld [vmem:[#allocation8 + $0x58] sm:$0xff]  ;;  %v76_v14 = vld [vmem:[#allocation3 + $0x38] sm:$0xff]  ;;  %vm658_vm11 = vcmask 786112   ;;  %vm665_vm12 = vcmask 851712   ;;  %vm672_vm13 = vcmask 917312  }
  0x2c   :  { %780 = vmatmul.mubr.msk.f32.vlgmr.msra.gmra.mxu0 %vm94_vm0, %v70_v3  ;;  %803 = vmatprep.subr.mxu0 %v319_v6  ;;  %v75_v12 = vld [vmem:[#allocation3 + $0x30] sm:$0xff]  ;;  %v314_v15 = vld [vmem:[#allocation8 + $0x50] sm:$0xff]  ;;  %v313_v17 = vld [vmem:[#allocation8 + $0x48] sm:$0xff]  ;;  %vm679_vm14 = vcmask 982912   ;;  %vm686_vm15 = vcmask 1048512  }
  0x2d   :  { %782 = vmatprep.mubr.msk.f32.mxu0 %vm94_vm0, %v71_v4  ;;  %804 = vmatpush3.msra.mxu0 %v319_v6  ;;  %v77_v16 = vld [vmem:[#allocation3 + $0x40] sm:$0xff]  ;;  %v78_v18 = vld [vmem:[#allocation3 + $0x48] sm:$0xff]  ;;  %v312_v19 = vld [vmem:[#allocation8 + $0x40] sm:$0xff] }
  0x2e   :  { %805 = vmatprep.subr.mxu0 %v318_v7  ;;  %860 = vmatprep.subr.mxu1 %v318_v7  ;;  %v79_v20 = vld [vmem:[#allocation3 + $0x50] sm:$0xff]  ;;  %v311_v21 = vld [vmem:[#allocation8 + $0x38] sm:$0xff]  ;;  %v80_v22 = vld [vmem:[#allocation3 + $0x58] sm:$0xff] }
  0x2f   :  { %806 = vmatpush3.msra.mxu0 %v318_v7  ;;  %876 = vmatpush3.msra.mxu1 %v318_v7  ;;  %v310_v23 = vld [vmem:[#allocation8 + $0x30] sm:$0xff]  ;;  %v309_v25 = vld [vmem:[#allocation8 + $0x28] sm:$0xff]  ;;  %v82_v26 = vld [vmem:[#allocation3 + $0x68] sm:$0xff] }
  0x30   :  { %783 = vmatmul.mubr.msk.f32.gmra.mxu0 %vm94_vm0, %v72_v5  ;;  %807 = vmatprep.subr.mxu0 %v317_v9  ;;  %v81_v24 = vld [vmem:[#allocation3 + $0x60] sm:$0xff]  ;;  %v308_v27 = vld [vmem:[#allocation8 + $0x20] sm:$0xff]  ;;  %v307_v29 = vld [vmem:[#allocation8 + $0x18] sm:$0xff] }
  0x31   :  { %785 = vmatprep.mubr.msk.f32.mxu0 %vm94_vm0, %v73_v8  ;;  %808 = vmatpush3.msra.mxu0 %v317_v9  ;;  %v83_v28 = vld [vmem:[#allocation3 + $0x70] sm:$0xff]  ;;  %v84_v30 = vld [vmem:[#allocation3 + $0x78] sm:$0xff]  ;;  %v306_v31 = vld [vmem:[#allocation8 + $0x10] sm:$0xff] }
  0x32   :  { %809 = vmatprep.subr.mxu0 %v316_v11  ;;  %861 = vmatprep.subr.mxu1 %v317_v9  ;;  %v305_v32 = vld [vmem:[#allocation8 + $0x8] sm:$0xff]  ;;  %v304_v33 = vld [vmem:[#allocation8] sm:$0xff]  ;;  %v706_v34 = vld [vmem:[%s1161_s2] ss:$0 sm:$0xff] }
  0x33   :  { %810 = vmatpush3.msra.mxu0 %v316_v11  ;;  %877 = vmatpush3.msra.mxu1 %v317_v9 }
  0x34   :  { %786 = vmatmul.mubr.msk.f32.gmra.mxu0 %vm94_vm0, %v74_v10  ;;  %811 = vmatprep.subr.mxu0 %v315_v13 }
  0x35   :  { %788 = vmatprep.mubr.msk.f32.mxu0 %vm94_vm0, %v75_v12  ;;  %812 = vmatpush3.msra.mxu0 %v315_v13 }
  0x36   :  { %813 = vmatprep.subr.mxu0 %v314_v15  ;;  %862 = vmatprep.subr.mxu1 %v316_v11 }
  0x37   :  { %814 = vmatpush3.msra.mxu0 %v314_v15  ;;  %878 = vmatpush3.msra.mxu1 %v316_v11 }
  0x38   :  { %789 = vmatmul.mubr.msk.f32.gmra.mxu0 %vm94_vm0, %v76_v14  ;;  %815 = vmatprep.subr.mxu0 %v313_v17 }
  0x39   :  { %791 = vmatprep.mubr.msk.f32.mxu0 %vm94_vm0, %v77_v16  ;;  %816 = vmatpush3.msra.mxu0 %v313_v17 }
  0x3a   :  { %817 = vmatprep.subr.mxu0 %v312_v19  ;;  %863 = vmatprep.subr.mxu1 %v315_v13 }
  0x3b   :  { %818 = vmatpush3.msra.mxu0 %v312_v19  ;;  %879 = vmatpush3.msra.mxu1 %v315_v13 }
  0x3c   :  { %792 = vmatmul.mubr.msk.f32.gmra.mxu0 %vm94_vm0, %v78_v18  ;;  %819 = vmatprep.subr.mxu0 %v311_v21 }
  0x3d   :  { %794 = vmatprep.mubr.msk.f32.mxu0 %vm94_vm0, %v79_v20  ;;  %820 = vmatpush3.msra.mxu0 %v311_v21 }
  0x3e   :  { %821 = vmatprep.subr.mxu0 %v310_v23  ;;  %864 = vmatprep.subr.mxu1 %v314_v15 }
  0x3f   :  { %822 = vmatpush3.msra.mxu0 %v310_v23  ;;  %880 = vmatpush3.msra.mxu1 %v314_v15 }
  0x40   :  { %795 = vmatmul.mubr.msk.f32.gmra.mxu0 %vm94_vm0, %v80_v22  ;;  %823 = vmatprep.subr.mxu0 %v309_v25 }
  0x41   :  { %797 = vmatprep.mubr.msk.f32.mxu0 %vm94_vm0, %v81_v24  ;;  %824 = vmatpush3.msra.mxu0 %v309_v25 }
  0x42   :  { %825 = vmatprep.subr.mxu0 %v308_v27  ;;  %865 = vmatprep.subr.mxu1 %v313_v17 }
  0x43   :  { %826 = vmatpush3.msra.mxu0 %v308_v27  ;;  %881 = vmatpush3.msra.mxu1 %v313_v17 }
  0x44   :  { %798 = vmatmul.mubr.msk.f32.gmra.mxu0 %vm94_vm0, %v82_v26  ;;  %827 = vmatprep.subr.mxu0 %v307_v29 }
  0x45   :  { %800 = vmatprep.mubr.msk.f32.mxu0 %vm94_vm0, %v83_v28  ;;  %828 = vmatpush3.msra.mxu0 %v307_v29 }
  0x46   :  { %866 = vmatprep.subr.mxu1 %v312_v19  ;;  %829 = vmatprep.subr.mxu0 %v306_v31 }
  0x47   :  { %882 = vmatpush3.msra.mxu1 %v312_v19  ;;  %830 = vmatpush3.msra.mxu0 %v306_v31  ;;  %v1060_v19 = vld [vmem:[%s1163_s4] ss:$0 sm:$0xff] }
  0x48   :  { %801 = vmatmul.mubr.msk.f32.gmra.mxu0 %vm94_vm0, %v84_v30  ;;  %867 = vmatprep.subr.mxu1 %v311_v21 }
  0x49   :  { %883 = vmatpush3.msra.mxu1 %v311_v21  ;;  %831 = vmatprep.subr.mxu0 %v305_v32 }
  0x4a   :  { %868 = vmatprep.subr.mxu1 %v310_v23  ;;  %832 = vmatpush3.msra.mxu0 %v305_v32 }
  0x4b   :  { %884 = vmatpush3.msra.mxu1 %v310_v23  ;;  %833 = vmatprep.subr.mxu0 %v304_v33  ;;  %v1066_v23 = vld [vmem:[%s1164_s5] ss:$0 sm:$0xff] }
  0x4c   :  { %869 = vmatprep.subr.mxu1 %v309_v25  ;;  %834 = vmatpush3.msra.mxu0 %v304_v33 }
  0x4d   :  { %885 = vmatpush3.msra.mxu1 %v309_v25 }
  0x4e   :  { %870 = vmatprep.subr.mxu1 %v308_v27 }
  0x4f   :  { %886 = vmatpush3.msra.mxu1 %v308_v27 }
  0x50   :  { %871 = vmatprep.subr.mxu1 %v307_v29 }
  0x51   :  { %887 = vmatpush3.msra.mxu1 %v307_v29 }
  0x52   :  { %872 = vmatprep.subr.mxu1 %v306_v31 }
  0x53   :  { %888 = vmatpush3.msra.mxu1 %v306_v31 }
  0x54   :  { %873 = vmatprep.subr.mxu1 %v305_v32 }
  0x55   :  { %889 = vmatpush3.msra.mxu1 %v305_v32 }
  0x56   :  { %874 = vmatprep.subr.mxu1 %v304_v33 }
  0x57   :  { %890 = vmatpush3.msra.mxu1 %v304_v33 }
  0xec   :  { %v781_v35 = vpop.f32.mrf.mxu0 }
  0xed   :  { %v215_v36 = vadd.f32 %v781_v35, %v706_v34 }
  0xee   :  { %v209_v37 = vpop.f32.mrf.mxu0 }
  0xef   :  { %v210_v38 = vadd.f32 %v706_v34, %v209_v37  ;;  %v289_v41 = vmax.f32 %v215_v36, 0.0 }
  0xf0   :  { %v784_v39 = vpop.f32.mrf.mxu0 }
  0xf1   :  { %v288_v40 = vmax.f32 %v210_v38, 0.0  ;;  %v225_v42 = vadd.f32 %v784_v39, %v706_v34 }
  0xf2   :  { %v219_v43 = vpop.f32.mrf.mxu0 }
  0xf3   :  { %v220_v44 = vadd.f32 %v706_v34, %v219_v43  ;;  %835 = vmatprep.mubr.f32.mxu0 %v288_v40  ;;  %v291_v47 = vmax.f32 %v225_v42, 0.0 }
  0xf4   :  { %v787_v45 = vpop.f32.mrf.mxu0  ;;  %836 = vmatmul.mubr.f32.vlgmr.msra.gmra.mxu0 %v289_v41 }
  0xf5   :  { %v290_v46 = vmax.f32 %v220_v44, 0.0  ;;  %v235_v48 = vadd.f32 %v787_v45, %v706_v34 }
  0xf6   :  { %v229_v49 = vpop.f32.mrf.mxu0 }
  0xf7   :  { %v230_v50 = vadd.f32 %v706_v34, %v229_v49  ;;  %838 = vmatprep.mubr.f32.mxu0 %v290_v46  ;;  %v293_v53 = vmax.f32 %v235_v48, 0.0 }
  0xf8   :  { %v790_v51 = vpop.f32.mrf.mxu0  ;;  %839 = vmatmul.mubr.f32.gmra.mxu0 %v291_v47 }
  0xf9   :  { %v292_v52 = vmax.f32 %v230_v50, 0.0  ;;  %v245_v54 = vadd.f32 %v790_v51, %v706_v34 }
  0xfa   :  { %v239_v55 = vpop.f32.mrf.mxu0 }
  0xfb   :  { %841 = vmatprep.mubr.f32.mxu0 %v292_v52  ;;  %v240_v56 = vadd.f32 %v706_v34, %v239_v55  ;;  %v295_v59 = vmax.f32 %v245_v54, 0.0 }
  0xfc   :  { %v793_v57 = vpop.f32.mrf.mxu0  ;;  %842 = vmatmul.mubr.f32.gmra.mxu0 %v293_v53 }
  0xfd   :  { %v294_v58 = vmax.f32 %v240_v56, 0.0  ;;  %v255_v60 = vadd.f32 %v793_v57, %v706_v34 }
  0xfe   :  { %v249_v61 = vpop.f32.mrf.mxu0 }
  0xff   :  { %v250_v62 = vadd.f32 %v706_v34, %v249_v61  ;;  %844 = vmatprep.mubr.f32.mxu1 %v294_v58  ;;  %v297_v1 = vmax.f32 %v255_v60, 0.0 }
 0x100   :  { %v796_v63 = vpop.f32.mrf.mxu0  ;;  %845 = vmatmul.mubr.f32.vlgmr.msra.gmra.mxu1 %v295_v59 }
 0x101   :  { %v296_v0 = vmax.f32 %v250_v62, 0.0  ;;  %v265_v2 = vadd.f32 %v796_v63, %v706_v34 }
 0x102   :  { %v259_v3 = vpop.f32.mrf.mxu0 }
 0x103   :  { %v260_v4 = vadd.f32 %v706_v34, %v259_v3  ;;  %847 = vmatprep.mubr.f32.mxu1 %v296_v0  ;;  %v299_v7 = vmax.f32 %v265_v2, 0.0 }
 0x104   :  { %v799_v5 = vpop.f32.mrf.mxu0  ;;  %848 = vmatmul.mubr.f32.gmra.mxu1 %v297_v1 }
 0x105   :  { %v298_v6 = vmax.f32 %v260_v4, 0.0  ;;  %v275_v8 = vadd.f32 %v799_v5, %v706_v34 }
 0x106   :  { %v269_v9 = vpop.f32.mrf.mxu0 }
 0x107   :  { %v270_v10 = vadd.f32 %v706_v34, %v269_v9  ;;  %850 = vmatprep.mubr.f32.mxu1 %v298_v6  ;;  %v301_v13 = vmax.f32 %v275_v8, 0.0 }
 0x108   :  { %v802_v11 = vpop.f32.mrf.mxu0  ;;  %851 = vmatmul.mubr.f32.gmra.mxu1 %v299_v7 }
 0x109   :  { %v300_v12 = vmax.f32 %v270_v10, 0.0  ;;  %v285_v14 = vadd.f32 %v802_v11, %v706_v34 }
 0x10a   :  { %v279_v15 = vpop.f32.mrf.mxu0 }
 0x10b   :  { %v280_v16 = vadd.f32 %v706_v34, %v279_v15  ;;  %853 = vmatprep.mubr.f32.mxu1 %v300_v12  ;;  %v303_v18 = vmax.f32 %v285_v14, 0.0 }
 0x10c   :  { %854 = vmatmul.mubr.f32.gmra.mxu1 %v301_v13 }
 0x10d   :  { %v302_v17 = vmax.f32 %v280_v16, 0.0 }
 0x10f   :  { %856 = vmatprep.mubr.f32.mxu1 %v302_v17 }
 0x110   :  { %857 = vmatmul.mubr.f32.gmra.mxu1 %v303_v18 }
 0x1b4   :  { %v837_v20 = vpop.f32.mrf.mxu0 }
 0x1b5   :  { %v399_v21 = vadd.f32 %v837_v20, %v1060_v19 }
 0x1b6   :  { %v393_v22 = vpop.f32.mrf.mxu0 }
 0x1b7   :  { %v473_v24 = vmax.f32 %v399_v21, 0.0  ;;  %v394_v25 = vadd.f32 %v1060_v19, %v393_v22  ;;  %v577_v22 = vlaneseq }
 0x1b8   :  { %v840_v26 = vpop.f32.mrf.mxu0 }
 0x1b9   :  { %v472_v27 = vmax.f32 %v394_v25, 0.0  ;;  %v409_v28 = vadd.f32 %v840_v26, %v1060_v19  ;;  %v496_v29 = vmul.f32 %v1066_v23, %v473_v24  ;;  %v1099_v24 = vand.u32 127, %v577_v22 }
 0x1ba   :  { %v403_v30 = vpop.f32.mrf.mxu0 }
 0x1bb   :  { %v475_v31 = vmax.f32 %v409_v28, 0.0  ;;  %v404_v32 = vadd.f32 %v1060_v19, %v403_v30  ;;  %513 = vadd.xlane.f32.xlu0 %v496_v29  ;;  %v495_v37 = vmul.f32 %v1066_v23, %v472_v27  ;;  %v583_v26 = vadd.s32 4294967288, %v1099_v24 }
 0x1bc   :  { %v843_v33 = vpop.f32.mrf.mxu0  ;;  %v1107_v27 = vstv %s1165_s6  ;;  %v590_v28 = vadd.s32 4294967280, %v1099_v24  ;;  %v597_v29 = vadd.s32 4294967272, %v1099_v24  ;;  %s988_s6 = smov [#allocation9]  }
 0x1bd   :  { %v474_v34 = vmax.f32 %v404_v32, 0.0  ;;  %v419_v35 = vadd.f32 %v843_v33, %v1060_v19  ;;  %v498_v36 = vmul.f32 %v1066_v23, %v475_v31  ;;  %v604_v33 = vadd.s32 4294967264, %v1099_v24  ;;  %s696_s21 = sshll.u32 %s988_s6, 4  ;;  %s697_s21 = int_to_ptr.vmem [resolvable:$true] %s696_s21 }
 0x1be   :  { %v413_v38 = vpop.f32.mrf.mxu0  ;;  %s957_s22 = scalar_lea.vmem %s697_s21, 16  ;;  %s961_s23 = scalar_lea.vmem %s697_s21, 32 }
 0x1bf   :  { %v414_v39 = vadd.f32 %v1060_v19, %v413_v38  ;;  %517 = vadd.xlane.f32.xlu1 %v498_v36  ;;  %511 = vadd.xlane.f32.xlu0 %v495_v37  ;;  %v477_v41 = vmax.f32 %v419_v35, 0.0  ;;  %v497_v44 = vmul.f32 %v1066_v23, %v474_v34  ;;  %v611_v37 = vadd.s32 4294967256, %v1099_v24  ;;  %p958_p1 = scmp.ne.s32.totalorder %s697_s21, %s957_s22  ;;  %p962_p2 = scmp.lt.s32.totalorder %s697_s21, %s697_s21 }
 0x1c0   :  { %v846_v40 = vpop.f32.mrf.mxu1  ;;  %p963_p3 = scmp.lt.s32.totalorder %s961_s23, %s957_s22 }
 0x1c1   :  { %v476_v42 = vmax.f32 %v414_v39, 0.0  ;;  %v429_v43 = vadd.f32 %v846_v40, %v1060_v19  ;;  %v500_v52 = vmul.f32 %v1066_v23, %v477_v41 }
 0x1c2   :  { %v423_v45 = vpop.f32.mrf.mxu1  ;;  %p964_p4 = por %p963_p3, %p962_p2 }
 0x1c3   :  { %v424_v46 = vadd.f32 %v1060_v19, %v423_v45  ;;  %515 = vadd.xlane.f32.xlu1 %v497_v44  ;;  %v499_v47 = vmul.f32 %v1066_v23, %v476_v42  ;;  %v479_v49 = vmax.f32 %v429_v43, 0.0  ;;  %v618_v44 = vadd.s32 4294967248, %v1099_v24 }
 0x1c4   :  { %v849_v48 = vpop.f32.mrf.mxu1  ;;  %p965_p5 = pnand %p964_p4, %p958_p1 }
 0x1c5   :  { %v478_v50 = vmax.f32 %v424_v46, 0.0  ;;  %v439_v51 = vadd.f32 %v849_v48, %v1060_v19  ;;  %519 = vadd.xlane.f32.xlu0 %v499_v47  ;;  %v502_v60 = vmul.f32 %v1066_v23, %v479_v49 }
 0x1c6   :  { %v433_v53 = vpop.f32.mrf.mxu1 }
 0x1c7   :  { %v434_v54 = vadd.f32 %v1060_v19, %v433_v53  ;;  %521 = vadd.xlane.f32.xlu1 %v500_v52  ;;  %v501_v55 = vmul.f32 %v1066_v23, %v478_v50  ;;  %v481_v57 = vmax.f32 %v439_v51, 0.0  ;;  %v625_v50 = vadd.s32 4294967240, %v1099_v24 }
 0x1c8   :  { %v852_v56 = vpop.f32.mrf.mxu1 }
 0x1c9   :  { %v480_v58 = vmax.f32 %v434_v54, 0.0  ;;  %v449_v59 = vadd.f32 %v852_v56, %v1060_v19  ;;  %523 = vadd.xlane.f32.xlu0 %v501_v55  ;;  %v504_v4 = vmul.f32 %v1066_v23, %v481_v57  ;;  %v632_v54 = vadd.s32 4294967232, %v1099_v24 }
 0x1ca   :  { %v443_v61 = vpop.f32.mrf.mxu1 }
 0x1cb   :  { %v444_v62 = vadd.f32 %v1060_v19, %v443_v61  ;;  %525 = vadd.xlane.f32.xlu1 %v502_v60  ;;  %v503_v63 = vmul.f32 %v1066_v23, %v480_v58  ;;  %v483_v1 = vmax.f32 %v449_v59, 0.0  ;;  %v639_v61 = vadd.s32 4294967224, %v1099_v24 }
 0x1cc   :  { %v855_v0 = vpop.f32.mrf.mxu1 }
 0x1cd   :  { %v482_v2 = vmax.f32 %v444_v62, 0.0  ;;  %v459_v3 = vadd.f32 %v855_v0, %v1060_v19  ;;  %527 = vadd.xlane.f32.xlu0 %v503_v63  ;;  %v506_v12 = vmul.f32 %v1066_v23, %v483_v1 }
 0x1ce   :  { %v453_v5 = vpop.f32.mrf.mxu1 }
 0x1cf   :  { %v454_v6 = vadd.f32 %v1060_v19, %v453_v5  ;;  %529 = vadd.xlane.f32.xlu1 %v504_v4  ;;  %v505_v7 = vmul.f32 %v1066_v23, %v482_v2  ;;  %v485_v9 = vmax.f32 %v459_v3, 0.0 }
 0x1d0   :  { %v858_v8 = vpop.f32.mrf.mxu1 }
 0x1d1   :  { %v484_v10 = vmax.f32 %v454_v6, 0.0  ;;  %v469_v11 = vadd.f32 %v858_v8, %v1060_v19  ;;  %531 = vadd.xlane.f32.xlu0 %v505_v7  ;;  %v508_v18 = vmul.f32 %v1066_v23, %v485_v9  ;;  %v646_v7 = vadd.s32 4294967216, %v1099_v24 }
 0x1d2   :  { %v463_v13 = vpop.f32.mrf.mxu1 }
 0x1d3   :  { %v464_v14 = vadd.f32 %v1060_v19, %v463_v13  ;;  %533 = vadd.xlane.f32.xlu1 %v506_v12  ;;  %v507_v15 = vmul.f32 %v1066_v23, %v484_v10  ;;  %v487_v16 = vmax.f32 %v469_v11, 0.0  ;;  %v1101_v19 = vshrl.u32 %v577_v22, 7 }
 0x1d4   :  { %v653_v13 = vadd.s32 4294967208, %v1099_v24  ;;  %v667_v22 = vadd.s32 4294967192, %v1099_v24 }
 0x1d5   :  { %v486_v17 = vmax.f32 %v464_v14, 0.0  ;;  %535 = vadd.xlane.f32.xlu0 %v507_v15  ;;  %v510_v21 = vmul.f32 %v1066_v23, %v487_v16  ;;  %v586_v34 = vsub.s32 %v583_v26, %v1101_v19  ;;  %v593_v36 = vsub.s32 %v590_v28, %v1101_v19 }
 0x1d6   :  { %v600_v38 = vsub.s32 %v597_v29, %v1101_v19  ;;  %v607_v43 = vsub.s32 %v604_v33, %v1101_v19  ;;  %v614_v49 = vsub.s32 %v611_v37, %v1101_v19  ;;  %v621_v58 = vsub.s32 %v618_v44, %v1101_v19 }
 0x1d7   :  { %537 = vadd.xlane.f32.xlu1 %v508_v18  ;;  %v509_v20 = vmul.f32 %v1066_v23, %v486_v17  ;;  %v581_v23 = vsub.s32 %v1099_v24, %v1101_v19  ;;  %v628_v1 = vsub.s32 %v625_v50, %v1101_v19  ;;  %v635_v3 = vsub.s32 %v632_v54, %v1101_v19 }
 0x1d8   :  { %v642_v9 = vsub.s32 %v639_v61, %v1101_v19  ;;  %v660_v15 = vadd.s32 4294967200, %v1099_v24  ;;  %v656_v29 = vsub.s32 %v653_v13, %v1101_v19 }
 0x1d9   :  { %539 = vadd.xlane.f32.xlu0 %v509_v20  ;;  %v649_v20 = vsub.s32 %v646_v7, %v1101_v19 }
 0x1db   :  { %541 = vadd.xlane.f32.xlu1 %v510_v21 }
 0x244   :  { %v514_v25 = vpop.xlane.xlu0 %513 }
 0x245   :  { %v546_v35 = vadd.f32 %v1107_v27, %v514_v25 }
 0x247   :  { %v587_v45 = vrot.slane %v546_v35, %v586_v34  ;;  %v674_v34 = vadd.s32 4294967184, %v1099_v24 }
 0x248   :  { %v518_v30 = vpop.xlane.xlu1 %517  ;;  %v512_v31 = vpop.xlane.xlu0 %511 }
 0x249   :  { %v545_v32 = vadd.f32 %v1107_v27, %v512_v31  ;;  %v548_v39 = vadd.f32 %v1107_v27, %v518_v30 }
 0x24b   :  { %v582_v40 = vrot.slane %v545_v32, %v581_v23  ;;  %v601_v51 = vrot.slane %v548_v39, %v600_v38  ;;  %v663_v23 = vsub.s32 %v660_v15, %v1101_v19 }
 0x24c   :  { %v516_v41 = vpop.xlane.xlu1 %515 }
 0x24d   :  { %v547_v42 = vadd.f32 %v1107_v27, %v516_v41  ;;  %v589_v52 = vsel %vm588_vm1, %v587_v45, %v582_v40  ;;  %v681_v40 = vadd.s32 4294967176, %v1099_v24  ;;  %v677_v45 = vsub.s32 %v674_v34, %v1101_v19 }
 0x24e   :  { %v520_v46 = vpop.xlane.xlu0 %519 }
 0x24f   :  { %v594_v47 = vrot.slane %v547_v42, %v593_v36  ;;  %v549_v48 = vadd.f32 %v1107_v27, %v520_v46  ;;  %v670_v36 = vsub.s32 %v667_v22, %v1101_v19  ;;  %v684_v50 = vsub.s32 %v681_v40, %v1101_v19 }
 0x250   :  { %v522_v53 = vpop.xlane.xlu1 %521 }
 0x251   :  { %v596_v55 = vsel %vm595_vm2, %v594_v47, %v589_v52  ;;  %v608_v56 = vrot.slane %v549_v48, %v607_v43  ;;  %v550_v57 = vadd.f32 %v1107_v27, %v522_v53 }
 0x252   :  { %v603_v59 = vsel %vm602_vm3, %v601_v51, %v596_v55  ;;  %v524_v60 = vpop.xlane.xlu0 %523 }
 0x253   :  { %v610_v62 = vsel %vm609_vm4, %v608_v56, %v603_v59  ;;  %v615_v63 = vrot.slane %v550_v57, %v614_v49  ;;  %v551_v0 = vadd.f32 %v1107_v27, %v524_v60 }
 0x254   :  { %v526_v2 = vpop.xlane.xlu1 %525 }
 0x255   :  { %v617_v4 = vsel %vm616_vm5, %v615_v63, %v610_v62  ;;  %v622_v5 = vrot.slane %v551_v0, %v621_v58  ;;  %v552_v6 = vadd.f32 %v1107_v27, %v526_v2 }
 0x256   :  { %v528_v8 = vpop.xlane.xlu0 %527 }
 0x257   :  { %v624_v10 = vsel %vm623_vm6, %v622_v5, %v617_v4  ;;  %v629_v11 = vrot.slane %v552_v6, %v628_v1  ;;  %v553_v12 = vadd.f32 %v1107_v27, %v528_v8 }
 0x258   :  { %v530_v14 = vpop.xlane.xlu1 %529 }
 0x259   :  { %v631_v16 = vsel %vm630_vm7, %v629_v11, %v624_v10  ;;  %v636_v17 = vrot.slane %v553_v12, %v635_v3  ;;  %v554_v18 = vadd.f32 %v1107_v27, %v530_v14 }
 0x25a   :  { %v532_v21 = vpop.xlane.xlu0 %531 }
 0x25b   :  { %v638_v25 = vsel %vm637_vm8, %v636_v17, %v631_v16  ;;  %v643_v26 = vrot.slane %v554_v18, %v642_v9  ;;  %v555_v28 = vadd.f32 %v1107_v27, %v532_v21 }
 0x25c   :  { %v534_v30 = vpop.xlane.xlu1 %533 }
 0x25d   :  { %v645_v31 = vsel %vm644_vm9, %v643_v26, %v638_v25  ;;  %v650_v32 = vrot.slane %v555_v28, %v649_v20  ;;  %v556_v33 = vadd.f32 %v1107_v27, %v534_v30 }
 0x25e   :  { %v536_v35 = vpop.xlane.xlu0 %535 }
 0x25f   :  { %v652_v37 = vsel %vm651_vm10, %v650_v32, %v645_v31  ;;  %v657_v38 = vrot.slane %v556_v33, %v656_v29  ;;  %v557_v39 = vadd.f32 %v1107_v27, %v536_v35 }
 0x260   :  { %v538_v41 = vpop.xlane.xlu1 %537 }
 0x261   :  { %v659_v42 = vsel %vm658_vm11, %v657_v38, %v652_v37  ;;  %v664_v43 = vrot.slane %v557_v39, %v663_v23  ;;  %v558_v44 = vadd.f32 %v1107_v27, %v538_v41 }
 0x262   :  { %v540_v46 = vpop.xlane.xlu0 %539 }
 0x263   :  { %v666_v47 = vsel %vm665_vm12, %v664_v43, %v659_v42  ;;  %v671_v48 = vrot.slane %v558_v44, %v670_v36  ;;  %v559_v49 = vadd.f32 %v1107_v27, %v540_v46 }
 0x264   :  { %v542_v51 = vpop.xlane.xlu1 %541 }
 0x265   :  { %v673_v52 = vsel %vm672_vm13, %v671_v48, %v666_v47  ;;  %v678_v24 = vrot.slane %v559_v49, %v677_v45  ;;  %v560_v53 = vadd.f32 %v1107_v27, %v542_v51 }
 0x267   :  { %v685_v54 = vrot.slane %v560_v53, %v684_v50  ;;  %v680_v55 = vsel %vm679_vm14, %v678_v24, %v673_v52 }
 0x269   :  { %v687_v56 = vsel %vm686_vm15, %v685_v54, %v680_v55 }
 0x26a   :  { %689 = vst [vmem:[#allocation9] sm:$0x1] %v687_v56 }
 0x26b   :  { %968 = shalt.err (!%p965_p5)
}
 0x26c   :  { %699 = dma.vmem_to_hbm [thread:$0]  %s697_s21, 16, %s1166_s7, [#allocation5]  }
 0x26d   :  { %981 = dma.done.wait [#allocation5], 16  }
 0x26e   :  { %982 = vsyncadd [#allocation5], 4294967280 }
 0x26f   :  { %703 = vsyncpa [#allocation4], 1 }
 0x270   :  { %704 = vsyncpa [#allocation7], 1 }
 0x271   :  { %705 = vsyncpa [#allocation5], 1 }

</bundles_post_ra>
